<compile_context>
chip_gen: v7x
topology: tpu7x:2x2x1
jax: 0.10.0
libtpu: 0.0.40
codegen_flags: <defaults>
</compile_context>

<pallas_src>
import jax
import jax.numpy as jnp
import numpy as np
from jax.experimental import pallas as pl
from jax.experimental.pallas import tpu as pltpu

EPSI = 1e-07
SIGMA_DATA = 1.0
_LANES = 128
_SUBLANES = 8
_MXU_MIN_C = 8            # channel mix: VPU broadcast-FMAs below this, MXU dot at/above
_STREAM_CAP = 48 << 20    # hard cap on the double-buffered x/noise stream footprint


def _vmem_capacity_bytes():
    """Physical VMEM per TensorCore; conservative 64 MiB fallback (v7x-sized)."""
    try:
        cap = int(pltpu.get_tpu_info().vmem_capacity_bytes)
        if cap > 0:
            return cap
    except Exception:
        pass
    return 64 << 20


def _pick_spatial_tile(hw, c, itemsize, max_tile=None):
    """Largest lane-aligned spatial tile dividing H*W that fits the VMEM stream budget."""
    if hw % _LANES != 0:
        raise ValueError("H*W must be a multiple of 128 for this kernel")
    # double-buffered streaming footprint: 2 inputs x 2 pipeline buffers x (C*T*itemsize)
    stream_budget = min(_vmem_capacity_bytes() // 2, _STREAM_CAP)
    t_cap = stream_budget // (4 * c * itemsize)
    if max_tile is not None:
        t_cap = min(t_cap, int(max_tile))
    t_cap = min(t_cap, hw)
    t_cap = max(_LANES, (t_cap // _LANES) * _LANES)
    for t in range(t_cap, 0, -_LANES):
        if hw % t == 0:
            return t
    return _LANES


def _ve_loss_kernel(coef_ref, x_ref, noise_ref, w_ref, off_ref, out_ref):
    """One (batch, outer spatial chunk, inner spatial tile) grid step.

    coef_ref : SMEM (B, 4)     per-batch [a_tgt, b_tgt, c_in, c_in*sigma]
    x_ref    : VMEM (C, T)     clean image tile (upstream dtype)
    noise_ref: VMEM (C, T)     gaussian noise tile (upstream dtype)
    w_ref    : VMEM (C, C)     synthetic-net 1x1-conv weight (resident, f32)
    off_ref  : VMEM (C, 1)     fused bias + c_noise*t_emb + class embedding
    out_ref  : VMEM (CP, 128)  sublane-full, lane-dense per-(batch, chunk) partial sums
    """
    b = pl.program_id(0)
    i = pl.program_id(2)

    a_tgt = coef_ref[b, 0]
    b_tgt = coef_ref[b, 1]
    c_in = coef_ref[b, 2]
    cin_sig = coef_ref[b, 3]

    # cast AFTER load so bf16 inputs stream from HBM at half the traffic
    x = x_ref[...].astype(jnp.float32)        # (C, T)
    noise = noise_ref[...].astype(jnp.float32)
    C, T = x.shape
    CP = out_ref.shape[0]

    # preconditioned net input: c_in * (x + sigma * noise)
    x_in = c_in * x + cin_sig * noise

    # synthetic denoiser: channel-mixing 1x1 conv
    if C >= _MXU_MIN_C:
        h = jnp.dot(w_ref[...], x_in, preferred_element_type=jnp.float32,
                    precision=jax.lax.Precision.HIGHEST)
    else:
        # tiny C: unrolled VPU broadcast-FMAs, skip the MXU round-trip
        w = w_ref[...]
        h = w[:, 0:1] * x_in[0:1, :]
        for j in range(1, C):
            h = h + w[:, j:j + 1] * x_in[j:j + 1, :]

    x_pred = h + off_ref[...]                 # (C, T) + (C, 1) broadcast

    # v-target folded to two FMAs (no x_noisy temp, no per-element divide)
    v_target = a_tgt * x + b_tgt * noise

    diff = x_pred - v_target
    sq = diff * diff

    # lane-tile-local partial reduction: (C, T) -> (C, T/128, 128) -> (C, 128)
    partial = sq.reshape(C, T // _LANES, _LANES).sum(axis=1)
    if CP > C:  # pad to a sublane-full block so the accumulator store is unmasked
        partial = jnp.concatenate(
            [partial, jnp.zeros((CP - C, _LANES), jnp.float32)], axis=0)

    @pl.when(i == 0)
    def _():
        out_ref[...] = jnp.zeros_like(out_ref)

    out_ref[...] += partial


def ve_elu_diffusion_loss(x_nchw, x_classes, sigmas, noise_nchw, params,
                          sigma_data=SIGMA_DATA, max_tile=None):
    """Returns the scalar v-diffusion MSE loss (same semantics as the module)."""
    B, C, H, W = x_nchw.shape
    HW = H * W
    itemsize = jnp.dtype(x_nchw.dtype).itemsize
    T = _pick_spatial_tile(HW, C, itemsize, max_tile)
    n_s = HW // T
    n_outer = 2 if (n_s % 2 == 0 and n_s >= 2) else 1   # feeds both v7x TensorCores at small B
    n_inner = n_s // n_outer
    CP = max(_SUBLANES, -(-C // _SUBLANES) * _SUBLANES)

    # no dtype cast here: keep the upstream dtype on the HBM stream
    x = x_nchw.reshape(B, C, HW)
    noise = noise_nchw.reshape(B, C, HW)

    # get_scale_weights (per-batch scalar glue) + coefficient folding, plain JAX
    sd = jnp.float32(sigma_data)
    sig = sigmas.astype(jnp.float32)
    c_skip = sd ** 2 / (sig ** 2 + sd ** 2)
    c_out = -sig * sd * (sd ** 2 + sig ** 2) ** -0.5
    c_in = (sig ** 2 + sd ** 2) ** -0.5
    c_noise = jnp.arctan(sig) / jnp.pi * 2.0

    inv_c_out = 1.0 / (c_out + EPSI)
    a_tgt = (1.0 - c_skip) * inv_c_out          # v_target = a*x + b*noise
    b_tgt = -c_skip * sig * inv_c_out
    cin_sig = c_in * sig                        # net_in = c_in*x + cin_sig*noise
    coefs = jnp.stack([a_tgt, b_tgt, c_in, cin_sig], axis=1).astype(jnp.float32)

    w_net, b_net, temb, emb_table = params
    # fused per-batch channel offset: bias + c_noise * t_emb + class embedding
    off = (b_net[None, :, :]
           + c_noise[:, None, None] * temb[None, :, :]
           + emb_table[x_classes][:, :, None]).astype(jnp.float32)     # (B, C, 1)

    bytes_accessed = int(x.size * itemsize + noise.size * itemsize
                         + B * n_outer * CP * _LANES * 4
                         + w_net.size * 4 + off.size * 4 + coefs.size * 4)
    flops = int(2 * B * C * C * HW + 10 * B * C * HW)
    cost = pl.CostEstimate(flops=flops, transcendentals=0,
                           bytes_accessed=bytes_accessed)

    # raise the scoped-VMEM limit so the bigger tiles can be double-buffered,
    # but stay well inside the physical per-core VMEM (64 MiB on v7x)
    vmem_limit = min(int(_vmem_capacity_bytes() * 3 // 4), 100 << 20)

    partials = pl.pallas_call(
        _ve_loss_kernel,
        out_shape=jax.ShapeDtypeStruct((B, n_outer, CP, _LANES), jnp.float32),
        grid=(B, n_outer, n_inner),
        in_specs=[
            pl.BlockSpec(memory_space=pltpu.MemorySpace.SMEM),            # coefs (B, 4)
            pl.BlockSpec((None, C, T), lambda b, o, i: (b, 0, o * n_inner + i)),  # x
            pl.BlockSpec((None, C, T), lambda b, o, i: (b, 0, o * n_inner + i)),  # noise
            pl.BlockSpec(memory_space=pltpu.MemorySpace.VMEM),            # w_net (C, C)
            pl.BlockSpec((None, C, 1), lambda b, o, i: (b, 0, 0)),        # off (B, C, 1)
        ],
        out_specs=pl.BlockSpec((None, None, CP, _LANES),
                               lambda b, o, i: (b, o, 0, 0)),
        compiler_params=pltpu.CompilerParams(
            dimension_semantics=("parallel", "parallel", "arbitrary"),
            vmem_limit_bytes=vmem_limit),
        cost_estimate=cost,
    )(coefs, x, noise, w_net.astype(jnp.float32), off)

    return jnp.sum(partials) / jnp.float32(B * C * HW)


def _reference_loss(x_nchw, x_classes, sigmas, noise_nchw, params,
                    sigma_data=SIGMA_DATA):
    B, C, H, W = x_nchw.shape
    x = x_nchw.reshape(B, C, H * W).astype(jnp.float32)
    noise = noise_nchw.reshape(B, C, H * W).astype(jnp.float32)
    w_net, b_net, temb, emb_table = params
    cls_emb = emb_table[x_classes][:, :, None]

    s = sigmas[:, None, None]
    sd = jnp.float32(sigma_data)
    x_noisy = x + s * noise
    c_skip = sd ** 2 / (s ** 2 + sd ** 2)
    c_out = -s * sd * (sd ** 2 + s ** 2) ** -0.5
    c_in = (s ** 2 + sd ** 2) ** -0.5
    c_noise = (jnp.arctan(sigmas) / jnp.pi * 2.0)[:, None, None]
    x_pred = (jnp.einsum('ij,bjk->bik', w_net, c_in * x_noisy,
                         precision=jax.lax.Precision.HIGHEST)
              + b_net[None] + c_noise * temb[None] + cls_emb)
    v_target = (x - c_skip * x_noisy) / (c_out + EPSI)
    return jnp.mean((x_pred - v_target) ** 2)


def _run_case(seed, B, C, H, W, num_classes=10, max_tile=None):
    key = jax.random.PRNGKey(seed)
    k1, k2, k3, k4, k5, k6, k7, k8 = jax.random.split(key, 8)

    x = jax.random.normal(k1, (B, C, H, W), jnp.float32)
    x_classes = jax.random.randint(k2, (B,), 0, num_classes)
    noise = jax.random.normal(k3, (B, C, H, W), jnp.float32)        # torch.randn_like(x)
    # distribution(num_samples=B): deterministic log-normal sigma sample
    sigmas = jnp.exp(jax.random.normal(k4, (B,), jnp.float32) - 1.2)

    # deterministic synthetic net parameters
    w_net = (jax.random.normal(k5, (C, C), jnp.float32) / jnp.sqrt(C)).astype(jnp.float32)
    b_net = 0.1 * jax.random.normal(k6, (C, 1), jnp.float32)
    temb = 0.1 * jax.random.normal(k7, (C, 1), jnp.float32)
    emb_table = 0.1 * jax.random.normal(k8, (num_classes, C), jnp.float32)
    params = (w_net, b_net, temb, emb_table)

    loss = jax.block_until_ready(
        ve_elu_diffusion_loss(x, x_classes, sigmas, noise, params, max_tile=max_tile))
    ref = jax.block_until_ready(
        _reference_loss(x, x_classes, sigmas, noise, params))

    assert np.isfinite(np.asarray(loss)), "loss is not finite"
    assert np.allclose(np.asarray(loss), np.asarray(ref), rtol=2e-3, atol=2e-3), (
        float(loss), float(ref))


if __name__ == "__main__":
    # primary case (module-scale defaults): single spatial tile, VPU channel-mix path
    _run_case(0, B=2, C=4, H=16, W=16)
    # MXU channel-mix path (C >= 8), single large tile
    _run_case(1, B=2, C=8, H=32, W=32)
    # forced small tile: exercises multi-tile accumulation + the outer 'parallel'
    # spatial axis (grid = (B, 2, 2))
    _run_case(2, B=2, C=4, H=32, W=32, max_tile=256)
    print("KERNEL_OK")
</pallas_src>

<mosaic_0001>
module attributes {stable_mosaic.version = 11 : i64} {
  func.func @_ve_loss_kernel(%arg0: i32, %arg1: i32, %arg2: i32, %arg3: memref<2x4xf32, #tpu.memory_space<smem>>, %arg4: memref<1x4x256xf32, #tpu.memory_space<vmem>>, %arg5: memref<1x4x256xf32, #tpu.memory_space<vmem>>, %arg6: memref<4x4xf32, #tpu.memory_space<vmem>>, %arg7: memref<1x4x1xf32, #tpu.memory_space<vmem>>, %arg8: memref<1x1x8x128xf32, #tpu.memory_space<vmem>>) attributes {dimension_semantics = [#tpu.dimension_semantics<parallel>, #tpu.dimension_semantics<parallel>, #tpu.dimension_semantics<arbitrary>], iteration_bounds = array<i64: 2, 1, 1>, scalar_prefetch = 0 : i64, scratch_operands = 0 : i64, tpu.core_type = #tpu.core_type<tc>, window_params = [{transform_indices = @transform_0, window_bounds = array<i64: 2, 4>}, {transform_indices = @transform_1, window_bounds = array<i64: 1, 4, 256>}, {transform_indices = @transform_2, window_bounds = array<i64: 1, 4, 256>}, {pipeline_mode = #tpu.pipeline_mode<synchronous>, transform_indices = @transform_3, window_bounds = array<i64: 4, 4>}, {transform_indices = @transform_4, window_bounds = array<i64: 1, 4, 1>}, {transform_indices = @transform_5, window_bounds = array<i64: 1, 1, 8, 128>}]} {
    %0 = arith.index_cast %arg0 : i32 to index
    %c0 = arith.constant 0 : index
    %1 = memref.load %arg3[%0, %c0] : memref<2x4xf32, #tpu.memory_space<smem>>
    %2 = arith.index_cast %arg0 : i32 to index
    %c1 = arith.constant 1 : index
    %3 = memref.load %arg3[%2, %c1] : memref<2x4xf32, #tpu.memory_space<smem>>
    %4 = arith.index_cast %arg0 : i32 to index
    %c2 = arith.constant 2 : index
    %5 = memref.load %arg3[%4, %c2] : memref<2x4xf32, #tpu.memory_space<smem>>
    %6 = arith.index_cast %arg0 : i32 to index
    %c3 = arith.constant 3 : index
    %7 = memref.load %arg3[%6, %c3] : memref<2x4xf32, #tpu.memory_space<smem>>
    %c0_0 = arith.constant 0 : index
    %c0_1 = arith.constant 0 : index
    %c0_2 = arith.constant 0 : index
    %8 = vector.load %arg4[%c0_0, %c0_1, %c0_2] : memref<1x4x256xf32, #tpu.memory_space<vmem>>, vector<1x4x256xf32>
    %9 = vector.shape_cast %8 : vector<1x4x256xf32> to vector<4x256xf32>
    %c0_3 = arith.constant 0 : index
    %c0_4 = arith.constant 0 : index
    %c0_5 = arith.constant 0 : index
    %10 = vector.load %arg5[%c0_3, %c0_4, %c0_5] : memref<1x4x256xf32, #tpu.memory_space<vmem>>, vector<1x4x256xf32>
    %11 = vector.shape_cast %10 : vector<1x4x256xf32> to vector<4x256xf32>
    %12 = vector.broadcast %5 : f32 to vector<4x256xf32>
    %13 = arith.mulf %12, %9 : vector<4x256xf32>
    %14 = vector.broadcast %7 : f32 to vector<4x256xf32>
    %15 = arith.mulf %14, %11 : vector<4x256xf32>
    %16 = arith.addf %13, %15 : vector<4x256xf32>
    %c0_6 = arith.constant 0 : index
    %c0_7 = arith.constant 0 : index
    %17 = vector.load %arg6[%c0_6, %c0_7] : memref<4x4xf32, #tpu.memory_space<vmem>>, vector<4x4xf32>
    %18 = vector.extract_strided_slice %17 {offsets = [0, 0], sizes = [4, 1], strides = [1, 1]} : vector<4x4xf32> to vector<4x1xf32>
    %19 = vector.extract_strided_slice %16 {offsets = [0, 0], sizes = [1, 256], strides = [1, 1]} : vector<4x256xf32> to vector<1x256xf32>
    %20 = vector.broadcast %18 : vector<4x1xf32> to vector<4x256xf32>
    %21 = vector.broadcast %19 : vector<1x256xf32> to vector<4x256xf32>
    %22 = arith.mulf %20, %21 : vector<4x256xf32>
    %23 = vector.extract_strided_slice %17 {offsets = [0, 1], sizes = [4, 1], strides = [1, 1]} : vector<4x4xf32> to vector<4x1xf32>
    %24 = vector.extract_strided_slice %16 {offsets = [1, 0], sizes = [1, 256], strides = [1, 1]} : vector<4x256xf32> to vector<1x256xf32>
    %25 = vector.broadcast %23 : vector<4x1xf32> to vector<4x256xf32>
    %26 = vector.broadcast %24 : vector<1x256xf32> to vector<4x256xf32>
    %27 = arith.mulf %25, %26 : vector<4x256xf32>
    %28 = arith.addf %22, %27 : vector<4x256xf32>
    %29 = vector.extract_strided_slice %17 {offsets = [0, 2], sizes = [4, 1], strides = [1, 1]} : vector<4x4xf32> to vector<4x1xf32>
    %30 = vector.extract_strided_slice %16 {offsets = [2, 0], sizes = [1, 256], strides = [1, 1]} : vector<4x256xf32> to vector<1x256xf32>
    %31 = vector.broadcast %29 : vector<4x1xf32> to vector<4x256xf32>
    %32 = vector.broadcast %30 : vector<1x256xf32> to vector<4x256xf32>
    %33 = arith.mulf %31, %32 : vector<4x256xf32>
    %34 = arith.addf %28, %33 : vector<4x256xf32>
    %35 = vector.extract_strided_slice %17 {offsets = [0, 3], sizes = [4, 1], strides = [1, 1]} : vector<4x4xf32> to vector<4x1xf32>
    %36 = vector.extract_strided_slice %16 {offsets = [3, 0], sizes = [1, 256], strides = [1, 1]} : vector<4x256xf32> to vector<1x256xf32>
    %37 = vector.broadcast %35 : vector<4x1xf32> to vector<4x256xf32>
    %38 = vector.broadcast %36 : vector<1x256xf32> to vector<4x256xf32>
    %39 = arith.mulf %37, %38 : vector<4x256xf32>
    %40 = arith.addf %34, %39 : vector<4x256xf32>
    %c0_8 = arith.constant 0 : index
    %c0_9 = arith.constant 0 : index
    %c0_10 = arith.constant 0 : index
    %41 = vector.load %arg7[%c0_8, %c0_9, %c0_10] : memref<1x4x1xf32, #tpu.memory_space<vmem>>, vector<1x4x1xf32>
    %42 = vector.shape_cast %41 : vector<1x4x1xf32> to vector<4x1xf32>
    %43 = vector.broadcast %42 : vector<4x1xf32> to vector<4x256xf32>
    %44 = arith.addf %40, %43 : vector<4x256xf32>
    %45 = vector.broadcast %1 : f32 to vector<4x256xf32>
    %46 = arith.mulf %45, %9 : vector<4x256xf32>
    %47 = vector.broadcast %3 : f32 to vector<4x256xf32>
    %48 = arith.mulf %47, %11 : vector<4x256xf32>
    %49 = arith.addf %46, %48 : vector<4x256xf32>
    %50 = arith.subf %44, %49 : vector<4x256xf32>
    %51 = arith.mulf %50, %50 : vector<4x256xf32>
    %52 = vector.shape_cast %51 : vector<4x256xf32> to vector<4x2x128xf32>
    %cst = arith.constant dense<0.000000e+00> : vector<4x128xf32>
    %53 = vector.multi_reduction <add>, %52, %cst [1] : vector<4x2x128xf32> to vector<4x128xf32>
    %cst_11 = arith.constant 0.000000e+00 : f32
    %54 = vector.broadcast %cst_11 : f32 to vector<4x128xf32>
    %55 = tpu.concatenate %53, %54 in 0 : vector<4x128xf32>, vector<4x128xf32> -> vector<8x128xf32>
    %c0_i32 = arith.constant 0 : i32
    %56 = arith.cmpi eq, %arg2, %c0_i32 : i32
    %57 = arith.extui %56 : i1 to i32
    %c0_i32_12 = arith.constant 0 : i32
    %58 = arith.cmpi ne, %57, %c0_i32_12 : i32
    scf.if %58 {
      %cst_21 = arith.constant 0.000000e+00 : f32
      %65 = vector.broadcast %cst_21 : f32 to vector<8x128xf32>
      %c0_22 = arith.constant 0 : index
      %c0_23 = arith.constant 0 : index
      %c0_24 = arith.constant 0 : index
      %c0_25 = arith.constant 0 : index
      %66 = vector.load %arg8[%c0_22, %c0_23, %c0_24, %c0_25] : memref<1x1x8x128xf32, #tpu.memory_space<vmem>>, vector<1x1x8x128xf32>
      %67 = vector.shape_cast %66 : vector<1x1x8x128xf32> to vector<8x128xf32>
      %68 = vector.shape_cast %65 : vector<8x128xf32> to vector<1x1x8x128xf32>
      tpu.vector_store %arg8[%c0_22, %c0_23, %c0_24, %c0_25], %68 {strides = array<i32>} : memref<1x1x8x128xf32, #tpu.memory_space<vmem>>, vector<1x1x8x128xf32>,
    } else {
    }
    %c0_13 = arith.constant 0 : index
    %c0_14 = arith.constant 0 : index
    %c0_15 = arith.constant 0 : index
    %c0_16 = arith.constant 0 : index
    %59 = vector.load %arg8[%c0_13, %c0_14, %c0_15, %c0_16] : memref<1x1x8x128xf32, #tpu.memory_space<vmem>>, vector<1x1x8x128xf32>
    %60 = vector.shape_cast %59 : vector<1x1x8x128xf32> to vector<8x128xf32>
    %61 = arith.addf %60, %55 : vector<8x128xf32>
    %c0_17 = arith.constant 0 : index
    %c0_18 = arith.constant 0 : index
    %c0_19 = arith.constant 0 : index
    %c0_20 = arith.constant 0 : index
    %62 = vector.load %arg8[%c0_17, %c0_18, %c0_19, %c0_20] : memref<1x1x8x128xf32, #tpu.memory_space<vmem>>, vector<1x1x8x128xf32>
    %63 = vector.shape_cast %62 : vector<1x1x8x128xf32> to vector<8x128xf32>
    %64 = vector.shape_cast %61 : vector<8x128xf32> to vector<1x1x8x128xf32>
    tpu.vector_store %arg8[%c0_17, %c0_18, %c0_19, %c0_20], %64 {strides = array<i32>} : memref<1x1x8x128xf32, #tpu.memory_space<vmem>>, vector<1x1x8x128xf32>,
    return
  }
  func.func @transform_0(%arg0: i32, %arg1: i32, %arg2: i32) -> (i32, i32) {
    %c0_i32 = arith.constant 0 : i32
    %c0_i32_0 = arith.constant 0 : i32
    %c0_i32_1 = arith.constant 0 : i32
    return %c0_i32, %c0_i32_0 : i32, i32
  }
  func.func @transform_1(%arg0: i32, %arg1: i32, %arg2: i32) -> (i32, i32, i32) {
    %c1_i32 = arith.constant 1 : i32
    %0 = arith.muli %arg1, %c1_i32 : i32
    %1 = arith.addi %0, %arg2 : i32
    %c0_i32 = arith.constant 0 : i32
    %c0_i32_0 = arith.constant 0 : i32
    return %arg0, %c0_i32, %1 : i32, i32, i32
  }
  func.func @transform_2(%arg0: i32, %arg1: i32, %arg2: i32) -> (i32, i32, i32) {
    %c1_i32 = arith.constant 1 : i32
    %0 = arith.muli %arg1, %c1_i32 : i32
    %1 = arith.addi %0, %arg2 : i32
    %c0_i32 = arith.constant 0 : i32
    %c0_i32_0 = arith.constant 0 : i32
    return %arg0, %c0_i32, %1 : i32, i32, i32
  }
  func.func @transform_3(%arg0: i32, %arg1: i32, %arg2: i32) -> (i32, i32) {
    %c0_i32 = arith.constant 0 : i32
    %c0_i32_0 = arith.constant 0 : i32
    %c0_i32_1 = arith.constant 0 : i32
    return %c0_i32, %c0_i32_0 : i32, i32
  }
  func.func @transform_4(%arg0: i32, %arg1: i32, %arg2: i32) -> (i32, i32, i32) {
    %c0_i32 = arith.constant 0 : i32
    %c0_i32_0 = arith.constant 0 : i32
    %c0_i32_1 = arith.constant 0 : i32
    return %arg0, %c0_i32, %c0_i32_0 : i32, i32, i32
  }
  func.func @transform_5(%arg0: i32, %arg1: i32, %arg2: i32) -> (i32, i32, i32, i32) {
    %c0_i32 = arith.constant 0 : i32
    %c0_i32_0 = arith.constant 0 : i32
    %c0_i32_1 = arith.constant 0 : i32
    return %arg0, %arg1, %c0_i32, %c0_i32_0 : i32, i32, i32, i32
  }
}

</mosaic_0001>

<bundles_post_ra>
// kernel: tpu_custom_call.1
= control target key start
LH: loop header
LB: loop body
LE: loop exit
PB: predicated region body
PF: predicated region fallthrough
CT: control target
= control target key end

     0   :  { %10 = vsyncpa [#allocation5], 0  ;;  %s1250_s0 = inlined_call_operand.hbm [shape: f32[2,4], index: 0, kind: input, shape index: {}]   ;;  %s1251_s1 = inlined_call_operand.hbm [shape: f32[2,4,256], index: 1, kind: input, shape index: {}]   ;;  %s1252_s2 = inlined_call_operand.vmem [shape: f32[2,4,256], index: 2, kind: input, shape index: {}]   ;;  %s1253_s3 = inlined_call_operand.vmem [shape: f32[4,4], index: 3, kind: input, shape index: {}]   ;;  %s1254_s4 = inlined_call_operand.vmem [shape: f32[2,4,1], index: 4, kind: input, shape index: {}]   ;;  %s1255_s5 = inlined_call_operand.hbm [shape: f32[2,1,8,128], index: 5, kind: output, shape index: {}]  }
   0x1   :  { %11 = vsyncpa [#allocation3], 0 }
   0x2   :  { %13 = vsyncpa [#allocation3 + $0x1], 0 }
   0x3   :  { %14 = vsyncpa [#allocation4], 0 }
   0x4   :  { %16 = vsyncpa [#allocation4 + $0x1], 0  ;;  %s987_s18 = smov 0   ;;  %s989_s19 = smov 0  }
   0x5   :  { %s991_s20 = smov 0   ;;  %s993_s21 = smov 0  }
   0x6   :  { %s995_s22 = smov 0   ;;  %s997_s23 = smov 0  }
   0x7 LB: > { %s708_s24 = sadd.s32 4294967295, %s945_s23   ;;  %s709_s25 = sadd.s32 4294967294, %s945_s23   ;;  %s945_s23 = sphi %s997_s23, %s22_s23   ;;  %s941_s22 = sphi %s995_s22, %s1279_s22   ;;  %s937_s21 = sphi %s993_s21, %s1278_s21   ;;  %s933_s20 = sphi %s991_s20, %s1277_s20   ;;  %s929_s19 = sphi %s989_s19, %s1276_s19   ;;  %s925_s18 = sphi %s987_s18, %s1275_s18  }
   0x8   : > { %p86_p0 = scmp.ne.s32.totalorder %s929_s19, %s925_s18  ;;  %p1021_p1 = scmp.eq.s32.totalorder %s708_s24, 0 }
   0x9   : > { %p1025_p2 = scmp.eq.s32.totalorder %s708_s24, 1  ;;  %p195_p3 = scmp.eq.s32.totalorder %s709_s25, 1 }
   0xa   : > { %s1260_s26 = scalar_select %p1021_p1, 1, 0 }
   0xb   : > { %p1031_p4 = por %p1021_p1, %p86_p0  ;;  %p710_p5 = scmp.ge.s32.totalorder %s945_s23, 1 }
   0xc   : > { %p1036_p6 = por %p195_p3, %p86_p0  ;;  %p202_p7 = scmp.lt.s32.totalorder %s945_s23, 3 }
   0xd   : > { %s1262_s28 = scalar_select %p1031_p4, 1, 0 }
   0xe   : > { %s1263_s29 = scalar_select %p1036_p6, 1, 0 }
   0xf   : > { %p1041_p8 = pnand %p710_p5, %p202_p7  ;;  %s41_s6 = sadd.s32 1, %s941_s22 }
  0x10   : > { %p1055_p12 = scmp.ge.s32.totalorder %s41_s6, 2  ;;  %s73_s9 = sadd.s32 1, %s933_s20 }
  0x11   : > { %p738_p10 = pneg %p1041_p8  ;;  %p80_p13 = scmp.ne.s32.totalorder %s933_s20, %s929_s19 }
  0x12   : > { %p81_p0 = scmp.eq.s32.totalorder %s945_s23, 0  ;;  %s816_s12 = scalar_lea.hbm %s1250_s0, 32 }
  0x13   : > { %p1051_p11 = pnand %p738_p10, %p1021_p1  ;;  %p817_p3 = scmp.ne.s32.totalorder %s1250_s0, %s816_s12 }
  0x14   : > { %p823_p9 = scmp.lt.u32.totalorder %s816_s12, %s1250_s0 }
  0x15   : > { %p818_p5 = pneg %p1051_p11 }
  0x17   : > { %p819_p7 = pnand %p818_p5, %p817_p3 }
  0x19   : > { %p820_p10 = pneg %p819_p7 }
  0x1b   : > { %p825_p6 = pnand %p823_p9, %p820_p10 }
  0x1d   : > { %828 = shalt.err (!%p825_p6)
}
  0x1e   : > { %s947_s17 = smov [#allocation2]   ;;  %s1281_s6 = smov (%p1055_p12, %s41_s6), 0 }
  0x1f   : > { %741 = dma.hbm_to_smem (!%p1051_p11), %s1250_s0, 32, %s947_s17, [#allocation5]  }
  0x20   : > { %p1086_p6 = por %p81_p0, %p80_p13  ;;  %p1095_p9 = por %p1025_p2, %p80_p13 }
  0x21   : > { %s68_s11 = ssub.s32 %s941_s22, %s1281_s6  ;;  %p751_p3 = scmp.lt.s32.totalorder %s945_s23, 2 }
  0x22   : > { %s1268_s10 = scalar_select %p1095_p9, 1, 0 }
  0x23   : > { %p71_p5 = scmp.eq.s32.totalorder %s68_s11, 0  ;;  %s227_s12 = sand.u32 1, %s933_s20  }
  0x24   : > { %s713_s8 = sshll.u32 %s227_s12, 3  ;;  %s728_s14 = sshll.u32 %s941_s22, 7 }
  0x25   : > { %s1104_s13 = scalar_select %p71_p5, %s933_s20, %s73_s9  }
  0x26   : > { %s1110_s17 = scalar_lea.hbm %s1251_s1, %s728_s14  ;;  %s231_s27 = scalar_lea.vmem [#allocation6], %s713_s8 }
  0x27   : > { %s242_s24 = sshll.u32 %s231_s27, 4  ;;  %p1116_p2 = pnand %p751_p3, %p1086_p6  ;;  %s1112_s24 = int_to_ptr.vmem [resolvable:$true] %s242_s24 }
  0x28   : > { %s228_s9 = scalar_lea.sflag [#allocation3], %s227_s12  ;;  %s829_s11 = scalar_lea.hbm %s1110_s17, 128 }
  0x29   : > { %p830_p11 = scmp.ne.s32.totalorder %s1110_s17, %s829_s11  ;;  %p831_p12 = pneg %p1116_p2 }
  0x2a   : > { %s834_s15 = scalar_lea.hbm %s1251_s1, 256  ;;  %p835_p7 = scmp.lt.u32.totalorder %s1110_s17, %s1251_s1 }
  0x2b   : > { %p832_p13 = pnand %p831_p12, %p830_p11  ;;  %p836_p10 = scmp.lt.u32.totalorder %s834_s15, %s829_s11 }
  0x2c   : > { %p838_p3 = scmp.lt.u32.totalorder %s829_s11, %s1110_s17 }
  0x2d   : > { %p833_p0 = pneg %p832_p13  ;;  %p837_p6 = por %p836_p10, %p835_p7 }
  0x2f   : > { %p839_p5 = por %p838_p3, %p837_p6 }
  0x31   : > { %p840_p9 = pnand %p839_p5, %p833_p0 }
  0x33   : > { %843 = shalt.err (!%p840_p9)
}
  0x34   : > { %s844_s12 = scalar_lea.vmem %s1112_s24, 128  ;;  %s948_s27 = smov [#allocation6]  }
  0x35   : > { %p845_p11 = scmp.ne.s32.totalorder %s1112_s24, %s844_s12  ;;  %s849_s8 = sshll.u32 %s948_s27, 4  ;;  %s850_s8 = int_to_ptr.vmem [resolvable:$false] %s849_s8 }
  0x36   : > { %s851_s14 = scalar_lea.vmem %s850_s8, 256  ;;  %p852_p1 = scmp.lt.s32.totalorder %s1112_s24, %s850_s8 }
  0x37   : > { %p847_p13 = pnand %p845_p11, %p831_p12  ;;  %p853_p7 = scmp.lt.s32.totalorder %s851_s14, %s844_s12 }
  0x39   : > { %p848_p4 = pneg %p847_p13  ;;  %p854_p10 = por %p853_p7, %p852_p1 }
  0x3b   : > { %p855_p6 = pnand %p854_p10, %p848_p4 }
  0x3d   : > { %858 = shalt.err (!%p855_p6)
}
  0x3e   : > { %745 = dma.hbm_to_vmem [thread:$0]  (!%p1116_p2), %s1110_s17, 128, %s1112_s24, %s228_s9  }
  0x3f   : > { %273 = sbr.rel (%p1041_p8) target bundleno = 265 (0x109), region = 40  ;;  %p1270_p9 = scmp.ne.s32.totalorder (!%p1041_p8), %s1260_s26, 0 }
  0x46   : > { %912 = dma.done.wait (%p1270_p9), [#allocation5], 32  }
  0x47   : > { %914 = vsyncadd (%p1270_p9), [#allocation5], 4294967264  ;;  %s1152_s11 = sand.u32 1, %s929_s19   ;;  %p1271_p1 = scmp.ne.s32.totalorder %s1262_s28, 0 }
  0x48   : > { %s718_s25 = sshll.u32 %s1152_s11, 3  ;;  %s280_s15 = scalar_lea.sflag [#allocation3], %s1152_s11 }
  0x49   : > { %s1158_s17 = scalar_lea.vmem [#allocation6], %s718_s25 }
  0x4a   : > { %916 = dma.done.wait (%p1271_p1), %s280_s15, 128  }
  0x4b   : > { %918 = vsyncadd (%p1271_p1), %s280_s15, 4294967168 }
  0x4c   : > { %288 = sfence }
  0x4d   : > { %v358_v0 = vld [vmem:[%s1253_s3] sm:$0xf]  ;;  %v949_v1 = vmov 0   ;;  %v950_v2 = vmov 2   ;;  %p329_p4 = scmp.lt.s32.totalorder %s937_s21, 1  ;;  %v951_v3 = vmov 1   ;;  %v365_v6 = vlaneseq }
  0x4e   : > { %810 = vset.pattern.permute.xlu0 %v949_v1  ;;  %812 = vset.pattern.permute.xlu1 %v950_v2  ;;  %v952_v4 = vmov 3   ;;  %s1173_s12 = sshll.u32 %s937_s21, 7  ;;  %v351_v7 = vld [vmem:[%s1158_s17] sm:$0xff]  ;;  %v953_v53 = vmov 1983009808   ;;  %vm515_vm0 = vcmask 1041408  }
  0x4f   : > { %361 = vperm.xlu0 %810, %v358_v0   ;;  %412 = vperm.xlu1 %812, %v358_v0   ;;  %s330_s24 = scalar_select %p329_p4, %s937_s21, 1  ;;  %v1181_v11 = vshrl.u32 %v365_v6, 7  ;;  %v483_v54 = vunpack.c.l.s4 %v953_v53  ;;  %v954_v62 = vmov 1934713408   ;;  %vm548_vm1 = vcmask 1041409  }
  0x50   : > { %s347_s27 = sadd.s32 2, %s1173_s12  ;;  %s349_s8 = sadd.s32 3, %s1173_s12  ;;  %v500_v63 = vunpack.c.l.s4 %v954_v62  ;;  %vm550_vm2 = vcmask 1042434   ;;  %vm552_vm3 = vcmask 1043459   ;;  %vm555_vm4 = vcmask 1043456  }
  0x51   : > { %s722_s9 = sshll.u32 %s330_s24, 2  ;;  %s348_s14 = sld [smem:[#allocation2 + %s347_s27]]  ;;  %v367_v14 = vsub.s32 0, %v1181_v11  ;;  %v371_v16 = vsub.s32 4, %v1181_v11  ;;  %v391_v17 = vsub.s32 1, %v1181_v11  ;;  %v395_v18 = vsub.s32 5, %v1181_v11 }
  0x52   : > { %s342_s16 = scalar_lea.vmem %s1254_s4, %s722_s9  ;;  %s350_s15 = sld [smem:[#allocation2 + %s349_s8]]  ;;  %v417_v19 = vsub.s32 2, %v1181_v11  ;;  %v421_v20 = vsub.s32 6, %v1181_v11  ;;  %v443_v21 = vsub.s32 3, %v1181_v11  ;;  %v447_v22 = vsub.s32 7, %v1181_v11 }
  0x53   : > { %811 = vset.pattern.permute.xlu0 %v951_v3  ;;  %813 = vset.pattern.permute.xlu1 %v952_v4  ;;  %v463_v5 = vld [vmem:[%s342_s16] sm:$0xf]  ;;  %s729_s26 = sshll.u32 %s330_s24, 3  ;;  %s345_s21 = sadd.s32 1, %s1173_s12 }
  0x54   : > { %386 = vperm.xlu0 %811, %v358_v0   ;;  %438 = vperm.xlu1 %813, %v358_v0   ;;  %s336_s9 = scalar_lea.vmem %s1252_s2, %s729_s26  ;;  %s344_s7 = sld [smem:[#allocation2 + %s1173_s12]] }
  0x55   : > { %v352_v10 = vld [vmem:[%s336_s9] sm:$0xff]  ;;  %s346_s16 = sld [smem:[#allocation2 + %s345_s21]]  ;;  %s324_s17 = scalar_lea.vmem [#allocation7], %s718_s25 }
  0x56   : > { %s580_s24 = sshll.u32 %s324_s17, 4  ;;  %p1272_p2 = scmp.ne.s32.totalorder %s1268_s10, 0  ;;  %s1203_s24 = int_to_ptr.vmem [resolvable:$true] %s580_s24 }
  0x57   : > { %v353_v8 = vstv %s348_s14  ;;  %s1201_s14 = scalar_lea.hbm %s1255_s5, %s1173_s12  ;;  %s859_s26 = scalar_lea.vmem %s1203_s24, 128 }
  0x58   : > { %814 = vset.pattern.permute.xlu1 %v949_v1  ;;  %815 = vset.pattern.permute.xlu0 %v949_v1  ;;  %v355_v9 = vstv %s350_s15  ;;  %v354_v12 = vmul.f32 %v353_v8, %v351_v7  ;;  %v484_v1 = vunpack.c.0.s8 %v483_v54  ;;  %v501_v8 = vunpack.c.0.s8 %v500_v63  ;;  %s566_s15 = scalar_lea.sflag [#allocation4], %s1152_s11  ;;  %p860_p8 = scmp.ne.s32.totalorder %s1203_s24, %s859_s26 }
  0x59   : > { %466 = vperm.xlu1 %814, %v463_v5   ;;  %v356_v13 = vmul.f32 %v355_v9, %v352_v10  ;;  %s956_s25 = smov [#allocation7]  }
  0x5a   : > { %v471_v33 = vstv %s344_s7  ;;  %p861_p12 = pnand %p860_p8, %p1272_p2  ;;  %s863_s30 = sshll.u32 %s956_s25, 4  ;;  %s864_s30 = int_to_ptr.vmem [resolvable:$false] %s863_s30 }
  0x5b   : > { %v357_v15 = vadd.f32 %v356_v13, %v354_v12  ;;  %v473_v34 = vstv %s346_s16  ;;  %v472_v41 = vmul.f32 %v471_v33, %v351_v7  ;;  %v487_v7 = vsub.s32 %v484_v1, %v1181_v11  ;;  %s865_s28 = scalar_lea.vmem %s864_s30, 256  ;;  %p866_p3 = scmp.lt.s32.totalorder %s1203_s24, %s864_s30 }
  0x5c   : > { %v474_v42 = vmul.f32 %v473_v34, %v352_v10  ;;  %p862_p0 = pneg %p861_p12  ;;  %p867_p5 = scmp.lt.s32.totalorder %s865_s28, %s859_s26 }
  0x5d   : > { %v368_v23 = vrot.slane %v357_v15, %v367_v14  ;;  %v372_v24 = vrot.slane %v357_v15, %v371_v16  ;;  %v392_v25 = vrot.slane %v357_v15, %v391_v17  ;;  %v396_v26 = vrot.slane %v357_v15, %v395_v18 }
  0x5e   : > { %v418_v27 = vrot.slane %v357_v15, %v417_v19  ;;  %v422_v28 = vrot.slane %v357_v15, %v421_v20  ;;  %v444_v31 = vrot.slane %v357_v15, %v443_v21  ;;  %v448_v32 = vrot.slane %v357_v15, %v447_v22  ;;  %p868_p11 = por %p867_p5, %p866_p3 }
  0x5f   : > { %v378_v35 = vrot.slane %v368_v23, %v367_v14  ;;  %v382_v36 = vrot.slane %v372_v24, %v367_v14  ;;  %v402_v37 = vrot.slane %v392_v25, %v391_v17  ;;  %v406_v38 = vrot.slane %v396_v26, %v391_v17 }
  0x60   : > { %v428_v39 = vrot.slane %v418_v27, %v417_v19  ;;  %v432_v40 = vrot.slane %v422_v28, %v417_v19  ;;  %v454_v43 = vrot.slane %v444_v31, %v443_v21  ;;  %v458_v44 = vrot.slane %v448_v32, %v443_v21  ;;  %p869_p13 = pnand %p868_p11, %p862_p0 }
  0x61   : > { %v475_v55 = vadd.f32 %v474_v42, %v472_v41  ;;  %v504_v14 = vsub.s32 %v501_v8, %v1181_v11  ;;  %v955_v23 = vmov 0.0  }
  0x63   : > { %v477_v4 = vcombine.high %v475_v55, %v475_v55 }
  0xce   : > { %v362_v29 = vpop.permute.xlu0 %361  ;;  %v413_v30 = vpop.permute.xlu1 %412 }
  0xcf   : > { %v383_v47 = vmul.f32 %v378_v35, %v362_v29  ;;  %v384_v48 = vmul.f32 %v382_v36, %v362_v29  ;;  %v433_v51 = vmul.f32 %v428_v39, %v413_v30  ;;  %v434_v52 = vmul.f32 %v432_v40, %v413_v30 }
  0xd3   : > { %v387_v45 = vpop.permute.xlu0 %386  ;;  %v439_v46 = vpop.permute.xlu1 %438 }
  0xd4   : > { %v407_v49 = vmul.f32 %v402_v37, %v387_v45  ;;  %v408_v50 = vmul.f32 %v406_v38, %v387_v45  ;;  %v459_v58 = vmul.f32 %v454_v43, %v439_v46  ;;  %v460_v59 = vmul.f32 %v458_v44, %v439_v46 }
  0xd6   : > { %v409_v56 = vadd.f32 %v407_v49, %v383_v47  ;;  %v410_v57 = vadd.f32 %v408_v50, %v384_v48 }
  0xd8   : > { %v435_v60 = vadd.f32 %v433_v51, %v409_v56  ;;  %v436_v61 = vadd.f32 %v434_v52, %v410_v57  ;;  %v467_v0 = vpop.permute.xlu1 %466 }
  0xda   : > { %v461_v2 = vadd.f32 %v459_v58, %v435_v60  ;;  %v462_v3 = vadd.f32 %v460_v59, %v436_v61 }
  0xdc   : > { %v469_v5 = vadd.f32 %v467_v0, %v461_v2  ;;  %v470_v6 = vadd.f32 %v467_v0, %v462_v3 }
  0xde   : > { %v479_v9 = vsub.f32 %v469_v5, %v475_v55  ;;  %v480_v10 = vsub.f32 %v470_v6, %v477_v4 }
  0xe0   : > { %v481_v12 = vmul.f32 %v479_v9, %v479_v9  ;;  %v489_v13 = vmul.f32 %v480_v10, %v480_v10 }
  0xe2   : > { %v488_v15 = vrot.slane %v481_v12, %v487_v7  ;;  %v496_v16 = vrot.slane %v489_v13, %v487_v7 }
  0xe4   : > { %v497_v17 = vcombine.low %v488_v15, %v496_v16  ;;  %v498_v18 = vcombine.high %v488_v15, %v496_v16 }
  0xe6   : > { %v505_v19 = vrot.slane %v497_v17, %v504_v14  ;;  %v512_v20 = vrot.slane %v498_v18, %v504_v14 }
  0xe8   : > { %v516_v21 = vsel %vm515_vm0, %v505_v19, 0.0  ;;  %v530_v22 = vsel %vm515_vm0, %v512_v20, 0.0  ;;  %v513_v24 = vcombine.high %v505_v19, %v955_v23  ;;  %v514_v25 = vcombine.high %v512_v20, %v955_v23 }
  0xe9   : > { %v517_v26 = vrot.slane %v516_v21, 4  ;;  %v531_v27 = vrot.slane %v530_v22, 4 }
  0xea   : > { %v523_v28 = vsel %vm515_vm0, %v513_v24, 0.0  ;;  %v537_v29 = vsel %vm515_vm0, %v514_v25, 0.0 }
  0xeb   : > { %v518_v30 = vadd.f32 %v517_v26, %v516_v21  ;;  %v532_v31 = vadd.f32 %v531_v27, %v530_v22  ;;  %v524_v32 = vrot.slane %v523_v28, 4  ;;  %v538_v11 = vrot.slane %v537_v29, 4 }
  0xed   : > { %v519_v33 = vrot.slane %v518_v30, 2  ;;  %v533_v34 = vrot.slane %v532_v31, 2  ;;  %v525_v35 = vadd.f32 %v524_v32, %v523_v28  ;;  %v539_v36 = vadd.f32 %v538_v11, %v537_v29 }
  0xef   : > { %v520_v37 = vadd.f32 %v519_v33, %v518_v30  ;;  %v534_v38 = vadd.f32 %v533_v34, %v532_v31  ;;  %v526_v39 = vrot.slane %v525_v35, 2  ;;  %v540_v40 = vrot.slane %v539_v36, 2 }
  0xf1   : > { %v521_v41 = vrot.slane %v520_v37, 1  ;;  %v527_v42 = vadd.f32 %v526_v39, %v525_v35  ;;  %v541_v43 = vadd.f32 %v540_v40, %v539_v36  ;;  %v535_v44 = vrot.slane %v534_v38, 1 }
  0xf3   : > { %v528_v45 = vrot.slane %v527_v42, 1  ;;  %v542_v46 = vrot.slane %v541_v43, 1  ;;  %v522_v47 = vadd.f32 %v521_v41, %v520_v37  ;;  %v536_v49 = vadd.f32 %v535_v44, %v534_v38 }
  0xf5   : > { %v529_v48 = vadd.f32 %v528_v45, %v527_v42  ;;  %v543_v50 = vadd.f32 %v542_v46, %v541_v43 }
  0xf7   : > { %v549_v51 = vsel %vm548_vm1, %v529_v48, %v522_v47 }
  0xf8   : > { %v551_v52 = vsel %vm550_vm2, %v536_v49, %v549_v51 }
  0xf9   : > { %v553_v53 = vsel %vm552_vm3, %v543_v50, %v551_v52 }
  0xfa   : > { %v556_v54 = vsel %vm555_vm4, %v553_v53, 0.0 }
  0xfb   : > { %564 = vst [vmem:[%s324_s17] sm:$0xff] %v556_v54 }
  0xfc   : > { %872 = shalt.err (!%p869_p13)
}
  0xfd   : > { %s873_s11 = scalar_lea.hbm %s1201_s14, 128  ;;  %s877_s21 = scalar_lea.hbm %s1255_s5, 256 }
  0xfe   : > { %p874_p7 = scmp.ne.s32.totalorder %s1201_s14, %s873_s11  ;;  %p878_p9 = scmp.lt.u32.totalorder %s1201_s14, %s1255_s5 }
  0xff   : > { %p879_p1 = scmp.lt.u32.totalorder %s877_s21, %s873_s11  ;;  %p881_p8 = scmp.lt.u32.totalorder %s873_s11, %s1201_s14 }
 0x100   : > { %p875_p10 = pnand %p874_p7, %p1272_p2 }
 0x101   : > { %p880_p4 = por %p879_p1, %p878_p9 }
 0x102   : > { %p876_p6 = pneg %p875_p10 }
 0x103   : > { %p882_p12 = por %p881_p8, %p880_p4 }
 0x105   : > { %p883_p0 = pnand %p882_p12, %p876_p6 }
 0x107   : > { %886 = shalt.err (!%p883_p0)
}
 0x108   : > { %736 = dma.vmem_to_hbm [thread:$0]  (%p1272_p2), %s1203_s24, 128, %s1201_s14, %s566_s15  }
 0x109 PF: > { %s592_s17 = sand.u32 1, %s925_s18   ;;  %p1273_p3 = scmp.ne.s32.totalorder %s1263_s29, 0 }
 0x10a   : > { %p1274_p5 = scmp.ge.s32.totalorder %s945_s23, 2  ;;  %s593_s27 = scalar_lea.sflag [#allocation4], %s592_s17 }
 0x10c   : > { %p747_p11 = pnand %p1274_p5, %p1273_p3 }
 0x10e   : > { %920 = dma.done.wait (!%p747_p11), %s593_s27, 128  }
 0x10f   : > { %922 = vsyncadd (!%p747_p11), %s593_s27, 4294967168  ;;  %s22_s23 = sadd.s32 1, %s945_s23   ;;  %s1275_s18 = smov %s929_s19 }
 0x110   : > { %p19_p13 = scmp.ge.s32.totalorder %s22_s23, 4   ;;  %s1276_s19 = smov %s933_s20 }
 0x111   : > { %s1277_s20 = smov %s1104_s13  ;;  %s1278_s21 = smov %s941_s22 }
 0x112   : > { %s1279_s22 = smov %s1281_s6  ;;  %21 = sbr.rel (!%p19_p13) target bundleno = 7 (0x7), region = 100 }
 0x119   :  { %598 = vsyncpa [#allocation3], 1 }
 0x11a   :  { %600 = vsyncpa [#allocation3 + $0x1], 1 }
 0x11b   :  { %601 = vsyncpa [#allocation4], 1 }
 0x11c   :  { %603 = vsyncpa [#allocation4 + $0x1], 1 }
 0x11d   :  { %604 = vsyncpa [#allocation5], 1 }
 0x11e   :  { %606 = vsyncpa [#allocation5 + $0x1], 1 }

</bundles_post_ra>
